<compile_context>
chip_gen: v7x
topology: tpu7x:2x2x1
jax: 0.10.0
libtpu: 0.0.40
codegen_flags: <defaults>
</compile_context>

<pallas_src>
import math

import jax
import jax.numpy as jnp
from jax.experimental import pallas as pl
from jax.experimental.pallas import tpu as pltpu


_EPS = 1e-8


def _make_kernel(hw):
    """Row-wise Laplace-PDF gating over a (tile_rows, hw) block."""
    inv_n = 1.0 / float(hw)
    sqrt2 = math.sqrt(2.0)

    def kernel(x_ref, o_ref):
        x = x_ref[...].astype(jnp.float32)                   # (T, HW)

        mu = jnp.sum(x, axis=-1, keepdims=True) * inv_n      # (T, 1)
        xmu = x - mu
        var = jnp.sum(xmu * xmu, axis=-1, keepdims=True) * inv_n
        std = jnp.sqrt(var + _EPS)

        # lap_b = std / sqrt(2)  ->  1/lap_b = sqrt(2)/std (per-row, exact)
        inv_lap_b = sqrt2 / std                               # (T, 1)

        pdf = jnp.exp(-jnp.abs(xmu) * inv_lap_b) * (0.5 * inv_lap_b)

        d = pdf + 1.0                                         # d >= 1
        # Full-tile reciprocal on the EUP + one Newton step for f32 accuracy.
        r = pl.reciprocal(d, approx=True)
        r = r * (2.0 - d * r)

        o_ref[...] = (x * r).astype(o_ref.dtype)

    return kernel


def lap_ablation_none(x, *, block_target_bytes=2 << 20,
                      vmem_limit_bytes=32 << 20):
    """x: [B, C, H, W] float array. Returns same shape/dtype."""
    b, c, h, w = x.shape
    rows = b * c
    hw = h * w

    itemsize = jnp.dtype(x.dtype).itemsize
    # Minimum sublane tile per dtype: 8 for 4-byte, 16 for 2-byte, 32 for 1-byte.
    sub = max(8, 32 // itemsize)

    # --- row-tile selection from a VMEM block budget --------------------------
    bytes_per_row = hw * itemsize
    max_tile = max(sub, (block_target_bytes // bytes_per_row) // sub * sub)
    # TODO(synk): if a single `sub`-row strip of H*W ever exceeds the block
    # budget (gigantic spatial dims), split H*W over a second grid axis with an
    # accumulator; not needed for typical feature-map sizes.

    if rows <= max_tile:
        tile = rows          # single full-extent block: always a legal block dim
    else:
        tile = max_tile      # multiple of `sub`; Pallas masks the partial last block

    grid = pl.cdiv(rows, tile)

    x2d = x.reshape(rows, hw)
    kernel = _make_kernel(hw)

    cost = pl.CostEstimate(
        flops=10 * rows * hw,
        transcendentals=rows * hw,
        bytes_accessed=2 * rows * hw * itemsize,
    )

    out2d = pl.pallas_call(
        kernel,
        out_shape=jax.ShapeDtypeStruct((rows, hw), x.dtype),
        grid_spec=pltpu.PrefetchScalarGridSpec(
            num_scalar_prefetch=0,
            grid=(grid,),
            in_specs=[pl.BlockSpec((tile, hw), lambda i: (i, 0))],
            out_specs=pl.BlockSpec((tile, hw), lambda i: (i, 0)),
        ),
        compiler_params=pltpu.CompilerParams(
            dimension_semantics=("parallel",),
            vmem_limit_bytes=vmem_limit_bytes,
        ),
        cost_estimate=cost,
    )(x2d)

    return out2d.reshape(b, c, h, w)


def _reference(x):
    x = x.astype(jnp.float32)
    mu = jnp.mean(x, axis=(2, 3), keepdims=True)
    xmu = x - mu
    std = jnp.sqrt(jnp.mean(xmu ** 2, axis=(2, 3), keepdims=True) + _EPS)
    lap_b = std / math.sqrt(2.0)
    pdf = jnp.exp(-jnp.abs(xmu) / lap_b) / (2.0 * lap_b)
    return x * (1.0 / (pdf + 1.0))


if __name__ == "__main__":
    key = jax.random.PRNGKey(0)

    # Primary check: lane-aligned shape (rows=8, hw=256), single block.
    B, C, H, W = 2, 4, 16, 16
    x = jax.random.normal(key, (B, C, H, W), dtype=jnp.float32)
    out = jax.block_until_ready(lap_ablation_none(x))
    ref = _reference(x)
    assert out.shape == x.shape and out.dtype == x.dtype
    assert jnp.allclose(out, ref, atol=1e-5, rtol=1e-5), float(
        jnp.max(jnp.abs(out - ref))
    )

    # Non-aligned H*W (196) and non-multiple-of-8 rows (6): exercises the
    # full-extent (no-padding) block path.
    x2 = jax.random.normal(jax.random.PRNGKey(0), (2, 3, 14, 14),
                           dtype=jnp.float32)
    out2 = jax.block_until_ready(lap_ablation_none(x2))
    ref2 = _reference(x2)
    assert out2.shape == x2.shape and out2.dtype == x2.dtype
    assert jnp.allclose(out2, ref2, atol=1e-5, rtol=1e-5), float(
        jnp.max(jnp.abs(out2 - ref2))
    )

    # Multi-block grid with a partial last block (rows=10, tile=8, grid=2):
    # exercises Pallas' masked write-back on the boundary block.
    x3 = jax.random.normal(jax.random.PRNGKey(0), (2, 5, 16, 16),
                           dtype=jnp.float32)
    out3 = jax.block_until_ready(
        lap_ablation_none(x3, block_target_bytes=8 * 16 * 16 * 4))
    ref3 = _reference(x3)
    assert out3.shape == x3.shape and out3.dtype == x3.dtype
    assert jnp.allclose(out3, ref3, atol=1e-5, rtol=1e-5), float(
        jnp.max(jnp.abs(out3 - ref3))
    )

    print("KERNEL_OK")
</pallas_src>

<mosaic_0001>
module attributes {stable_mosaic.version = 11 : i64} {
  func.func @kernel(%arg0: i32, %arg1: memref<8x256xf32, #tpu.memory_space<vmem>>, %arg2: memref<8x256xf32, #tpu.memory_space<vmem>>) attributes {dimension_semantics = [#tpu.dimension_semantics<parallel>], iteration_bounds = array<i64: 1>, scalar_prefetch = 0 : i64, scratch_operands = 0 : i64, tpu.core_type = #tpu.core_type<tc>, window_params = [{transform_indices = @transform_0, window_bounds = array<i64: 8, 256>}, {transform_indices = @transform_1, window_bounds = array<i64: 8, 256>}]} {
    %c0 = arith.constant 0 : index
    %c0_0 = arith.constant 0 : index
    %0 = vector.load %arg1[%c0, %c0_0] : memref<8x256xf32, #tpu.memory_space<vmem>>, vector<8x256xf32>
    %cst = arith.constant dense<0.000000e+00> : vector<8xf32>
    %1 = vector.multi_reduction <add>, %0, %cst [1] : vector<8x256xf32> to vector<8xf32>
    %2 = vector.shape_cast %1 : vector<8xf32> to vector<8x1xf32>
    %cst_1 = arith.constant 3.906250e-03 : f32
    %3 = vector.broadcast %cst_1 : f32 to vector<8x1xf32>
    %4 = arith.mulf %2, %3 : vector<8x1xf32>
    %5 = vector.broadcast %4 : vector<8x1xf32> to vector<8x256xf32>
    %6 = arith.subf %0, %5 : vector<8x256xf32>
    %7 = arith.mulf %6, %6 : vector<8x256xf32>
    %cst_2 = arith.constant dense<0.000000e+00> : vector<8xf32>
    %8 = vector.multi_reduction <add>, %7, %cst_2 [1] : vector<8x256xf32> to vector<8xf32>
    %9 = vector.shape_cast %8 : vector<8xf32> to vector<8x1xf32>
    %cst_3 = arith.constant 3.906250e-03 : f32
    %10 = vector.broadcast %cst_3 : f32 to vector<8x1xf32>
    %11 = arith.mulf %9, %10 : vector<8x1xf32>
    %cst_4 = arith.constant 9.99999993E-9 : f32
    %12 = vector.broadcast %cst_4 : f32 to vector<8x1xf32>
    %13 = arith.addf %11, %12 : vector<8x1xf32>
    %14 = math.sqrt %13 : vector<8x1xf32>
    %cst_5 = arith.constant 1.41421354 : f32
    %15 = vector.broadcast %cst_5 : f32 to vector<8x1xf32>
    %16 = arith.divf %15, %14 : vector<8x1xf32>
    %17 = math.absf %6 : vector<8x256xf32>
    %cst_6 = arith.constant 0.000000e+00 : f32
    %18 = vector.broadcast %cst_6 : f32 to vector<8x256xf32>
    %19 = arith.subf %18, %17 : vector<8x256xf32>
    %20 = vector.broadcast %16 : vector<8x1xf32> to vector<8x256xf32>
    %21 = arith.mulf %19, %20 : vector<8x256xf32>
    %22 = math.exp %21 : vector<8x256xf32>
    %cst_7 = arith.constant 5.000000e-01 : f32
    %23 = vector.broadcast %cst_7 : f32 to vector<8x1xf32>
    %24 = arith.mulf %23, %16 : vector<8x1xf32>
    %25 = vector.broadcast %24 : vector<8x1xf32> to vector<8x256xf32>
    %26 = arith.mulf %22, %25 : vector<8x256xf32>
    %cst_8 = arith.constant 1.000000e+00 : f32
    %27 = vector.broadcast %cst_8 : f32 to vector<8x256xf32>
    %28 = arith.addf %26, %27 : vector<8x256xf32>
    %29 = tpu.reciprocal %28 {approx = true} : vector<8x256xf32> -> vector<8x256xf32>
    %30 = arith.mulf %28, %29 : vector<8x256xf32>
    %cst_9 = arith.constant 2.000000e+00 : f32
    %31 = vector.broadcast %cst_9 : f32 to vector<8x256xf32>
    %32 = arith.subf %31, %30 : vector<8x256xf32>
    %33 = arith.mulf %29, %32 : vector<8x256xf32>
    %34 = arith.mulf %0, %33 : vector<8x256xf32>
    %c0_10 = arith.constant 0 : index
    %c0_11 = arith.constant 0 : index
    %35 = vector.load %arg2[%c0_10, %c0_11] : memref<8x256xf32, #tpu.memory_space<vmem>>, vector<8x256xf32>
    tpu.vector_store %arg2[%c0_10, %c0_11], %34 {strides = array<i32>} : memref<8x256xf32, #tpu.memory_space<vmem>>, vector<8x256xf32>,
    return
  }
  func.func @transform_0(%arg0: i32) -> (i32, i32) {
    %c0_i32 = arith.constant 0 : i32
    %c0_i32_0 = arith.constant 0 : i32
    return %arg0, %c0_i32 : i32, i32
  }
  func.func @transform_1(%arg0: i32) -> (i32, i32) {
    %c0_i32 = arith.constant 0 : i32
    %c0_i32_0 = arith.constant 0 : i32
    return %arg0, %c0_i32 : i32, i32
  }
}

</mosaic_0001>

<bundles_post_ra>
// kernel: tpu_custom_call.1
= control target key start
LH: loop header
LB: loop body
LE: loop exit
PB: predicated region body
PF: predicated region fallthrough
CT: control target
= control target key end

     0   :  { %6 = vsyncpa [#allocation3], 0  ;;  %s185_s0 = inlined_call_operand.hbm [shape: f32[8,256], index: 0, kind: input, shape index: {}]   ;;  %s186_s1 = inlined_call_operand.hbm [shape: f32[8,256], index: 1, kind: output, shape index: {}]  }
   0x1   :  { %7 = vsyncpa [#allocation4], 0  ;;  %s149_s6 = smov [#allocation2]   ;;  %s101_s10 = scalar_lea.hbm %s185_s0, 256 }
   0x2   :  { %s14_s7 = sshll.u32 %s149_s6, 4  ;;  %p102_p0 = scmp.ne.s32.totalorder %s185_s0, %s101_s10  ;;  %s15_s7 = int_to_ptr.vmem [resolvable:$true] %s14_s7 }
   0x3   :  { %p105_p1 = scmp.lt.u32.totalorder %s101_s10, %s185_s0 }
   0x5   :  { %p107_p2 = pnand %p105_p1, %p102_p0 }
   0x7   :  { %110 = shalt.err (!%p107_p2)
}
   0x8   :  { %s111_s15 = scalar_lea.vmem %s15_s7, 256  ;;  %p116_p4 = scmp.lt.s32.totalorder %s15_s7, %s15_s7 }
   0x9   :  { %p112_p3 = scmp.ne.s32.totalorder %s15_s7, %s111_s15  ;;  %p117_p5 = scmp.lt.s32.totalorder %s111_s15, %s111_s15 }
   0xb   :  { %p118_p6 = por %p117_p5, %p116_p4 }
   0xd   :  { %p119_p7 = pnand %p118_p6, %p112_p3 }
   0xf   :  { %122 = shalt.err (!%p119_p7)
}
  0x10   :  { %17 = dma.hbm_to_vmem [thread:$0]  %s185_s0, 256, %s15_s7, [#allocation3]  }
  0x11   :  { %145 = dma.done.wait [#allocation3], 256  }
  0x12   :  { %146 = vsyncadd [#allocation3], 4294967040  ;;  %v21_v0 = vld [vmem:[#allocation2] sm:$0xff]  ;;  %v22_v1 = vld [vmem:[#allocation2 + $0x8] sm:$0xff]  ;;  %s150_s0 = smov [#allocation5]  }
  0x13   :  { %v23_v2 = vadd.f32 %v22_v1, %v21_v0  ;;  %s78_s18 = sshll.u32 %s150_s0, 4  ;;  %s79_s18 = int_to_ptr.vmem [resolvable:$true] %s78_s18 }
  0x14   :  { %s123_s19 = scalar_lea.vmem %s79_s18, 256  ;;  %p128_p9 = scmp.lt.s32.totalorder %s79_s18, %s79_s18 }
  0x15   :  { %24 = vadd.xlane.f32.xlu0 %v23_v2  ;;  %p124_p8 = scmp.ne.s32.totalorder %s79_s18, %s123_s19  ;;  %p129_p10 = scmp.lt.s32.totalorder %s123_s19, %s123_s19 }
  0x17   :  { %p130_p11 = por %p129_p10, %p128_p9 }
  0x19   :  { %p131_p12 = pnand %p130_p11, %p124_p8 }
  0xa2   :  { %v25_v3 = vpop.xlane.xlu0 %24 }
  0xa3   :  { %v26_v4 = vmul.f32 0.00390625, %v25_v3 }
  0xa5   :  { %v27_v5 = vsub.f32 %v21_v0, %v26_v4  ;;  %v28_v6 = vsub.f32 %v22_v1, %v26_v4 }
  0xa7   :  { %v29_v7 = vmul.f32 %v27_v5, %v27_v5  ;;  %v30_v8 = vmul.f32 %v28_v6, %v28_v6  ;;  %v45_v18 = vand.u32 2147483647, %v27_v5  ;;  %v46_v19 = vand.u32 2147483647, %v28_v6 }
  0xa9   :  { %v31_v9 = vadd.f32 %v30_v8, %v29_v7  ;;  %v47_v21 = vsub.f32 0.0, %v45_v18  ;;  %v48_v22 = vsub.f32 0.0, %v46_v19 }
  0xab   :  { %32 = vadd.xlane.f32.xlu0 %v31_v9 }
 0x138   :  { %v33_v10 = vpop.xlane.xlu0 %32 }
 0x139   :  { %v34_v11 = vmul.f32 0.00390625, %v33_v10 }
 0x13b   :  { %v35_v12 = vadd.f32 1e-08, %v34_v11 }
 0x13d   :  { %89 = vrsqrt.f32 %v35_v12  ;;  %vm38_vm0 = vcmp.eq.f32.partialorder %v35_v12, inf  ;;  %v41_v15 = vand.u32 2147483648, %v35_v12  ;;  %vm40_vm1 = vcmp.eq.f32.partialorder %v35_v12, 0.0 }
 0x147   :  { %v90_v13 = vpop.eup %89 }
 0x148   :  { %v37_v14 = vmul.f32 %v90_v13, %v35_v12 }
 0x14a   :  { %v39_v16 = vsel %vm38_vm0, %v35_v12, %v37_v14 }
 0x14b   :  { %v42_v17 = vsel %vm40_vm1, %v41_v15, %v39_v16 }
 0x14c   :  { %91 = vrcp.f32 %v42_v17 }
 0x156   :  { %v92_v20 = vpop.eup %91 }
 0x157   :  { %v44_v23 = vmul.f32 1.4142135, %v92_v20 }
 0x159   :  { %v49_v24 = vmul.f32 %v47_v21, %v44_v23  ;;  %v50_v25 = vmul.f32 %v48_v22, %v44_v23  ;;  %v55_v28 = vmul.f32 0.5, %v44_v23 }
 0x15b   :  { %v51_v26 = vmul.f32 1.442695, %v49_v24  ;;  %v53_v27 = vmul.f32 1.442695, %v50_v25 }
 0x15d   :  { %93 = vpow2.f32 %v51_v26 }
 0x15e   :  { %95 = vpow2.f32 %v53_v27 }
 0x167   :  { %v94_v29 = vpop.eup %93 }
 0x168   :  { %v96_v30 = vpop.eup %95  ;;  %v56_v31 = vmul.f32 %v94_v29, %v55_v28 }
 0x169   :  { %v57_v32 = vmul.f32 %v96_v30, %v55_v28 }
 0x16a   :  { %v58_v33 = vadd.f32 1.0, %v56_v31 }
 0x16b   :  { %v59_v34 = vadd.f32 1.0, %v57_v32 }
 0x16c   :  { %97 = vrcp.f32 %v58_v33 }
 0x16d   :  { %99 = vrcp.f32 %v59_v34 }
 0x176   :  { %v98_v35 = vpop.eup %97 }
 0x177   :  { %v100_v36 = vpop.eup %99  ;;  %v62_v37 = vmul.f32 %v98_v35, %v58_v33 }
 0x178   :  { %v63_v38 = vmul.f32 %v100_v36, %v59_v34 }
 0x179   :  { %v64_v39 = vsub.f32 2.0, %v62_v37 }
 0x17a   :  { %v65_v40 = vsub.f32 2.0, %v63_v38 }
 0x17b   :  { %v66_v41 = vmul.f32 %v98_v35, %v64_v39 }
 0x17c   :  { %v67_v42 = vmul.f32 %v100_v36, %v65_v40 }
 0x17d   :  { %v68_v43 = vmul.f32 %v66_v41, %v21_v0 }
 0x17e   :  { %v69_v44 = vmul.f32 %v67_v42, %v22_v1 }
 0x17f   :  { %70 = vst [vmem:[#allocation5] sm:$0xff] %v68_v43 }
 0x180   :  { %71 = vst [vmem:[#allocation5 + $0x8] sm:$0xff] %v69_v44 }
 0x181   :  { %134 = shalt.err (!%p131_p12)
}
 0x182   :  { %s135_s22 = scalar_lea.hbm %s186_s1, 256 }
 0x183   :  { %p136_p13 = scmp.ne.s32.totalorder %s186_s1, %s135_s22  ;;  %p139_p0 = scmp.lt.u32.totalorder %s135_s22, %s186_s1 }
 0x185   :  { %p141_p1 = pnand %p139_p0, %p136_p13 }
 0x187   :  { %144 = shalt.err (!%p141_p1)
}
 0x188   :  { %81 = dma.vmem_to_hbm [thread:$0]  %s79_s18, 256, %s186_s1, [#allocation4]  }
 0x189   :  { %147 = dma.done.wait [#allocation4], 256  }
 0x18a   :  { %148 = vsyncadd [#allocation4], 4294967040 }
 0x18b   :  { %85 = vsyncpa [#allocation3], 1 }
 0x18c   :  { %86 = vsyncpa [#allocation4], 1 }

</bundles_post_ra>
